<compile_context>
chip_gen: v7x
topology: tpu7x:2x2x1
jax: 0.10.0
libtpu: 0.0.40
codegen_flags: <defaults>
</compile_context>

<pallas_src>
import jax
import jax.numpy as jnp
from jax.experimental import pallas as pl
from jax.experimental.pallas import tpu as pltpu

LANES = 128  # vreg lane width


def _round_up(x, m):
    return (x + m - 1) // m * m


def _make_rmspe_kernel(n_elements: int, eps: float):
    """Builds the kernel body with the (static) element count and eps baked in."""
    inv_n = 1.0 / float(n_elements)

    def kernel(pred_ref, tgt_ref, o_ref, acc_ref):
        step = pl.program_id(0)

        @pl.when(step == 0)
        def _init():
            acc_ref[...] = jnp.zeros_like(acc_ref)

        p = pred_ref[...]
        t = tgt_ref[...]
        rel = jnp.abs(p - t) / (jnp.abs(t) + eps)
        # Pure VPU accumulate; defer the cross-lane reduction to the last step.
        acc_ref[...] += rel * rel

        @pl.when(step == pl.num_programs(0) - 1)
        def _finalize():
            total = jnp.sum(acc_ref[...])
            o_ref[0, 0] = jnp.sqrt(total * inv_n)

    return kernel


def rmspe(pred, target, eps: float = 1e-8, *, tile_rows: int = 512):
    """Pallas RMSPE. pred/target: same shape, any rank. Returns a f32 scalar."""
    assert pred.shape == target.shape, (pred.shape, target.shape)

    n = 1
    for d in pred.shape:
        n *= d

    rows = -(-n // LANES)                                   # ceil(n / 128)
    tile_rows = _round_up(min(tile_rows, _round_up(rows, 8)), 8)
    rows_p = _round_up(rows, tile_rows)
    pad = rows_p * LANES - n

    # Flatten + pad once (jnp.pad, not zeros+dynamic-update-slice) into a
    # lane-dense (rows_p, 128) f32 layout.
    pf = jnp.pad(pred.reshape(-1).astype(jnp.float32), (0, pad)).reshape(rows_p, LANES)
    tf = jnp.pad(target.reshape(-1).astype(jnp.float32), (0, pad)).reshape(rows_p, LANES)

    grid = (rows_p // tile_rows,)

    out = pl.pallas_call(
        _make_rmspe_kernel(n, eps),
        out_shape=jax.ShapeDtypeStruct((1, 1), jnp.float32),
        grid=grid,
        in_specs=[
            pl.BlockSpec((tile_rows, LANES), lambda i: (i, 0)),
            pl.BlockSpec((tile_rows, LANES), lambda i: (i, 0)),
        ],
        out_specs=pl.BlockSpec(memory_space=pltpu.MemorySpace.SMEM),
        scratch_shapes=[pltpu.VMEM((tile_rows, LANES), jnp.float32)],
        compiler_params=pltpu.CompilerParams(
            # Single axis is a reduction (carried accumulator) -> arbitrary.
            dimension_semantics=("arbitrary",),
        ),
    )(pf, tf)
    return out[0, 0]


def _reference_rmspe(pred, target, eps=1e-8):
    rel = jnp.abs(pred - target) / (jnp.abs(target) + eps)
    return jnp.sqrt(jnp.mean(jnp.square(rel)))


if __name__ == "__main__":
    key = jax.random.PRNGKey(0)
    kp1, kt1, kp2, kt2 = jax.random.split(key, 4)

    # Case 1: multi-step grid (2048 elems -> 16 rows, tile_rows=8 -> grid=(2,)).
    shape1 = (2, 4, 16, 16)
    pred1 = jax.random.normal(kp1, shape1, jnp.float32)
    target1 = jax.random.normal(kt1, shape1, jnp.float32) + 1.0
    out1 = jax.block_until_ready(rmspe(pred1, target1, tile_rows=8))
    exp1 = _reference_rmspe(pred1, target1)
    assert out1.shape == ()
    assert jnp.allclose(out1, exp1, atol=1e-6, rtol=1e-4), (out1, exp1)

    # Case 2: ragged size exercising the zero-padding path (111 elements).
    shape2 = (3, 37)
    pred2 = jax.random.normal(kp2, shape2, jnp.float32)
    target2 = jax.random.normal(kt2, shape2, jnp.float32) + 1.0
    out2 = jax.block_until_ready(rmspe(pred2, target2))
    exp2 = _reference_rmspe(pred2, target2)
    assert jnp.allclose(out2, exp2, atol=1e-6, rtol=1e-4), (out2, exp2)

    print("KERNEL_OK")
</pallas_src>

<mosaic_0001>
module attributes {stable_mosaic.version = 11 : i64} {
  func.func @kernel(%arg0: i32, %arg1: memref<8x128xf32, #tpu.memory_space<vmem>>, %arg2: memref<8x128xf32, #tpu.memory_space<vmem>>, %arg3: memref<1x1xf32, #tpu.memory_space<smem>>, %arg4: memref<8x128xf32, #tpu.memory_space<vmem>>) attributes {dimension_semantics = [#tpu.dimension_semantics<arbitrary>], iteration_bounds = array<i64: 2>, scalar_prefetch = 0 : i64, scratch_operands = 1 : i64, tpu.core_type = #tpu.core_type<tc>, window_params = [{transform_indices = @transform_0, window_bounds = array<i64: 8, 128>}, {transform_indices = @transform_1, window_bounds = array<i64: 8, 128>}, {transform_indices = @transform_2, window_bounds = array<i64: 1, 1>}]} {
    %c0_i32 = arith.constant 0 : i32
    %0 = arith.cmpi eq, %arg0, %c0_i32 : i32
    %1 = arith.extui %0 : i1 to i32
    %c0_i32_0 = arith.constant 0 : i32
    %2 = arith.cmpi ne, %1, %c0_i32_0 : i32
    scf.if %2 {
      %cst_9 = arith.constant 0.000000e+00 : f32
      %18 = vector.broadcast %cst_9 : f32 to vector<8x128xf32>
      %c0_10 = arith.constant 0 : index
      %c0_11 = arith.constant 0 : index
      %19 = vector.load %arg4[%c0_10, %c0_11] : memref<8x128xf32, #tpu.memory_space<vmem>>, vector<8x128xf32>
      tpu.vector_store %arg4[%c0_10, %c0_11], %18 {strides = array<i32>} : memref<8x128xf32, #tpu.memory_space<vmem>>, vector<8x128xf32>,
    } else {
    }
    %c0 = arith.constant 0 : index
    %c0_1 = arith.constant 0 : index
    %3 = vector.load %arg1[%c0, %c0_1] : memref<8x128xf32, #tpu.memory_space<vmem>>, vector<8x128xf32>
    %c0_2 = arith.constant 0 : index
    %c0_3 = arith.constant 0 : index
    %4 = vector.load %arg2[%c0_2, %c0_3] : memref<8x128xf32, #tpu.memory_space<vmem>>, vector<8x128xf32>
    %5 = arith.subf %3, %4 : vector<8x128xf32>
    %6 = math.absf %5 : vector<8x128xf32>
    %7 = math.absf %4 : vector<8x128xf32>
    %cst = arith.constant 9.99999993E-9 : f32
    %8 = vector.broadcast %cst : f32 to vector<8x128xf32>
    %9 = arith.addf %7, %8 : vector<8x128xf32>
    %10 = arith.divf %6, %9 : vector<8x128xf32>
    %c0_4 = arith.constant 0 : index
    %c0_5 = arith.constant 0 : index
    %11 = vector.load %arg4[%c0_4, %c0_5] : memref<8x128xf32, #tpu.memory_space<vmem>>, vector<8x128xf32>
    %12 = arith.mulf %10, %10 : vector<8x128xf32>
    %13 = arith.addf %11, %12 : vector<8x128xf32>
    %c0_6 = arith.constant 0 : index
    %c0_7 = arith.constant 0 : index
    %14 = vector.load %arg4[%c0_6, %c0_7] : memref<8x128xf32, #tpu.memory_space<vmem>>, vector<8x128xf32>
    tpu.vector_store %arg4[%c0_6, %c0_7], %13 {strides = array<i32>} : memref<8x128xf32, #tpu.memory_space<vmem>>, vector<8x128xf32>,
    %c1_i32 = arith.constant 1 : i32
    %15 = arith.cmpi eq, %arg0, %c1_i32 : i32
    %16 = arith.extui %15 : i1 to i32
    %c0_i32_8 = arith.constant 0 : i32
    %17 = arith.cmpi ne, %16, %c0_i32_8 : i32
    scf.if %17 {
      %c0_9 = arith.constant 0 : index
      %c0_10 = arith.constant 0 : index
      %18 = vector.load %arg4[%c0_9, %c0_10] : memref<8x128xf32, #tpu.memory_space<vmem>>, vector<8x128xf32>
      %19 = vector.shape_cast %18 : vector<8x128xf32> to vector<1x8x128xf32>
      %cst_11 = arith.constant dense<0.000000e+00> : vector<1xf32>
      %20 = vector.multi_reduction <add>, %19, %cst_11 [1, 2] : vector<1x8x128xf32> to vector<1xf32>
      %21 = vector.shape_cast %20 : vector<1xf32> to vector<1x1x1xf32>
      %22 = vector.extract %21[0, 0, 0] : f32 from vector<1x1x1xf32>
      %cst_12 = arith.constant 4.8828125E-4 : f32
      %23 = arith.mulf %22, %cst_12 : f32
      %24 = math.sqrt %23 : f32
      %c0_13 = arith.constant 0 : index
      %c0_14 = arith.constant 0 : index
      %25 = memref.load %arg3[%c0_13, %c0_14] : memref<1x1xf32, #tpu.memory_space<smem>>
      memref.store %24, %arg3[%c0_13, %c0_14] : memref<1x1xf32, #tpu.memory_space<smem>>
    } else {
    }
    return
  }
  func.func @transform_0(%arg0: i32) -> (i32, i32) {
    %c0_i32 = arith.constant 0 : i32
    %c0_i32_0 = arith.constant 0 : i32
    return %arg0, %c0_i32 : i32, i32
  }
  func.func @transform_1(%arg0: i32) -> (i32, i32) {
    %c0_i32 = arith.constant 0 : i32
    %c0_i32_0 = arith.constant 0 : i32
    return %arg0, %c0_i32 : i32, i32
  }
  func.func @transform_2(%arg0: i32) -> (i32, i32) {
    %c0_i32 = arith.constant 0 : i32
    %c0_i32_0 = arith.constant 0 : i32
    %c0_i32_1 = arith.constant 0 : i32
    return %c0_i32, %c0_i32_0 : i32, i32
  }
}

</mosaic_0001>

<bundles_post_ra>
// kernel: tpu_custom_call.1
= control target key start
LH: loop header
LB: loop body
LE: loop exit
PB: predicated region body
PF: predicated region fallthrough
CT: control target
= control target key end

     0   :  { %7 = vsyncpa [#allocation4], 0  ;;  %s681_s0 = inlined_call_operand.hbm [shape: f32[16,128], index: 0, kind: input, shape index: {}]   ;;  %s682_s1 = inlined_call_operand.hbm [shape: f32[16,128], index: 1, kind: input, shape index: {}]   ;;  %s683_s2 = inlined_call_operand.hbm [shape: f32[1,1], index: 2, kind: output, shape index: {}]  }
   0x1   :  { %9 = vsyncpa [#allocation4 + $0x1], 0 }
   0x2   :  { %10 = vsyncpa [#allocation7], 0 }
   0x3   :  { %12 = vsyncpa [#allocation7 + $0x1], 0 }
   0x4   :  { %13 = vsyncpa [#allocation5], 0  ;;  %s517_s9 = smov 0   ;;  %s519_s10 = smov 0  }
   0x5   :  { %s521_s11 = smov 0   ;;  %s523_s12 = smov 0  }
   0x6 LB: > { %s536_s13 = sadd.s32 4294967295, %s496_s12   ;;  %s539_s14 = sadd.s32 1, %s496_s12   ;;  %s496_s12 = sphi %s523_s12, %s695_s12   ;;  %s492_s11 = sphi %s521_s11, %s694_s11   ;;  %s488_s10 = sphi %s519_s10, %s693_s10   ;;  %s484_s9 = sphi %s517_s9, %s692_s9  }
   0x7   : > { %s23_s15 = ssub.s32 %s496_s12, %s539_s14  ;;  %s26_s16 = sadd.s32 1, %s492_s11 }
   0x8   : > { %p24_p0 = scmp.eq.s32.totalorder %s23_s15, 0  ;;  %p33_p1 = scmp.ne.s32.totalorder %s492_s11, %s488_s10 }
   0x9   : > { %p34_p2 = scmp.eq.s32.totalorder %s496_s12, 0  ;;  %p39_p3 = scmp.ne.s32.totalorder %s488_s10, %s484_s9 }
   0xa   : > { %s549_s17 = scalar_select %p24_p0, %s492_s11, %s26_s16  }
   0xb   : > { %p35_p4 = por %p34_p2, %p33_p1  ;;  %p40_p5 = scmp.eq.s32.totalorder %s536_s13, 0 }
   0xc   : > { %p341_p6 = scmp.lt.s32.totalorder %s496_s12, 2  ;;  %s558_s19 = sand.u32 1, %s492_s11  }
   0xd   : > { %p553_p7 = por %p40_p5, %p39_p3  ;;  %s309_s20 = sshll.u32 %s558_s19, 3 }
   0xe   : > { %s310_s21 = sshll.u32 %s496_s12, 7  ;;  %s114_s25 = scalar_lea.vmem [#allocation3], %s309_s20 }
   0xf   : > { %s685_s18 = scalar_select %p553_p7, 1, 0 }
  0x10   : > { %s567_s24 = scalar_lea.hbm %s681_s0, %s310_s21  ;;  %s121_s26 = sshll.u32 %s114_s25, 4  ;;  %s571_s26 = int_to_ptr.vmem [resolvable:$true] %s121_s26 }
  0x11   : > { %p573_p8 = pnand %p341_p6, %p35_p4  ;;  %s111_s28 = scalar_lea.sflag [#allocation4], %s558_s19 }
  0x12   : > { %s382_s29 = scalar_lea.hbm %s567_s24, 128  ;;  %s387_s4 = scalar_lea.hbm %s681_s0, 256 }
  0x13   : > { %p383_p11 = scmp.ne.s32.totalorder %s567_s24, %s382_s29  ;;  %p384_p12 = pneg %p573_p8 }
  0x14   : > { %p388_p1 = scmp.lt.u32.totalorder %s567_s24, %s681_s0  ;;  %p389_p2 = scmp.lt.u32.totalorder %s387_s4, %s382_s29 }
  0x15   : > { %p385_p13 = pnand %p384_p12, %p383_p11  ;;  %p391_p4 = scmp.lt.u32.totalorder %s382_s29, %s567_s24 }
  0x16   : > { %p390_p3 = por %p389_p2, %p388_p1 }
  0x17   : > { %p386_p0 = pneg %p385_p13 }
  0x18   : > { %p392_p5 = por %p391_p4, %p390_p3 }
  0x1a   : > { %p393_p6 = pnand %p392_p5, %p386_p0 }
  0x1c   : > { %396 = shalt.err (!%p393_p6)
}
  0x1d   : > { %s397_s7 = scalar_lea.vmem %s571_s26, 128  ;;  %s498_s8 = smov [#allocation3]  }
  0x1e   : > { %p398_p11 = scmp.ne.s32.totalorder %s571_s26, %s397_s7  ;;  %s402_s9 = sshll.u32 %s498_s8, 4  ;;  %s403_s9 = int_to_ptr.vmem [resolvable:$false] %s402_s9 }
  0x1f   : > { %s404_s15 = scalar_lea.vmem %s403_s9, 256  ;;  %p405_p10 = scmp.lt.s32.totalorder %s571_s26, %s403_s9 }
  0x20   : > { %p400_p13 = pnand %p398_p11, %p384_p12  ;;  %p406_p1 = scmp.lt.s32.totalorder %s404_s15, %s397_s7 }
  0x22   : > { %p401_p9 = pneg %p400_p13  ;;  %p407_p2 = por %p406_p1, %p405_p10 }
  0x24   : > { %p408_p3 = pnand %p407_p2, %p401_p9 }
  0x26   : > { %411 = shalt.err (!%p408_p3)
}
  0x27   : > { %337 = dma.hbm_to_vmem [thread:$0]  (!%p573_p8), %s567_s24, 128, %s571_s26, %s111_s28  }
  0x28   : > { %p687_p0 = scmp.lt.s32.totalorder %s496_s12, 3  ;;  %p688_p4 = scmp.ge.s32.totalorder %s496_s12, 1 }
  0x29   : > { %s618_s25 = scalar_lea.hbm %s682_s1, %s310_s21  ;;  %s132_s29 = scalar_lea.vmem [#allocation6], %s309_s20 }
  0x2a   : > { %p609_p5 = pnand %p688_p4, %p687_p0  ;;  %s139_s30 = sshll.u32 %s132_s29, 4  ;;  %s140_s30 = int_to_ptr.vmem [resolvable:$true] %s139_s30 }
  0x2b   : > { %s129_s24 = scalar_lea.sflag [#allocation7], %s558_s19  ;;  %s412_s26 = scalar_lea.hbm %s618_s25, 128 }
  0x2c   : > { %s689_s16 = scalar_select %p609_p5, 1, 0 }
  0x2d   : > { %p413_p9 = scmp.ne.s32.totalorder %s618_s25, %s412_s26  ;;  %s417_s21 = scalar_lea.hbm %s682_s1, 256 }
  0x2e   : > { %p418_p11 = scmp.lt.u32.totalorder %s618_s25, %s682_s1  ;;  %p419_p13 = scmp.lt.u32.totalorder %s417_s21, %s412_s26 }
  0x2f   : > { %p415_p10 = pnand %p413_p9, %p384_p12  ;;  %p421_p2 = scmp.lt.u32.totalorder %s412_s26, %s618_s25 }
  0x30   : > { %p420_p1 = por %p419_p13, %p418_p11 }
  0x31   : > { %p416_p6 = pneg %p415_p10 }
  0x32   : > { %p422_p3 = por %p421_p2, %p420_p1 }
  0x34   : > { %p423_p0 = pnand %p422_p3, %p416_p6 }
  0x36   : > { %426 = shalt.err (!%p423_p0)
}
  0x37   : > { %s427_s19 = scalar_lea.vmem %s140_s30, 128  ;;  %s499_s20 = smov [#allocation6]  }
  0x38   : > { %p428_p4 = scmp.ne.s32.totalorder %s140_s30, %s427_s19  ;;  %s432_s5 = sshll.u32 %s499_s20, 4  ;;  %s433_s5 = int_to_ptr.vmem [resolvable:$false] %s432_s5 }
  0x39   : > { %s434_s6 = scalar_lea.vmem %s433_s5, 256  ;;  %p435_p7 = scmp.lt.s32.totalorder %s140_s30, %s433_s5 }
  0x3a   : > { %p430_p9 = pnand %p428_p4, %p384_p12  ;;  %p436_p5 = scmp.lt.s32.totalorder %s434_s6, %s427_s19 }
  0x3c   : > { %p431_p10 = pneg %p430_p9  ;;  %p437_p11 = por %p436_p5, %p435_p7 }
  0x3e   : > { %p438_p13 = pnand %p437_p11, %p431_p10 }
  0x40   : > { %441 = shalt.err (!%p438_p13)
}
  0x41   : > { %340 = dma.hbm_to_vmem [thread:$0]  (!%p573_p8), %s618_s25, 128, %s140_s30, %s129_s24  }
  0x42   : > { %p690_p6 = scmp.ne.s32.totalorder %s689_s16, 0 }
  0x43   : > { %s150_s7 = sand.u32 (!%p690_p6), 1, %s488_s10   ;;  %p691_p12 = scmp.ne.s32.totalorder (!%p690_p6), %s685_s18, 0 }
  0x44   : > { %148 = sbr.rel (%p690_p6) target bundleno = 405 (0x195), region = 28  ;;  %s314_s8 = sshll.u32 (!%p690_p6), %s150_s7, 3 }
  0x45   : > { %s151_s9 = scalar_lea.sflag (!%p690_p6), [#allocation4], %s150_s7  ;;  %s154_s15 = scalar_lea.vmem (!%p690_p6), [#allocation3], %s314_s8 }
  0x4b   : > { %471 = dma.done.wait (%p691_p12), %s151_s9, 128  }
  0x4c   : > { %473 = vsyncadd (%p691_p12), %s151_s9, 4294967168  ;;  %s160_s22 = scalar_lea.sflag [#allocation7], %s150_s7  ;;  %s163_s23 = scalar_lea.vmem [#allocation6], %s314_s8 }
  0x4d   : > { %475 = dma.done.wait (%p691_p12), %s160_s22, 128  }
  0x4e   : > { %477 = vsyncadd (%p691_p12), %s160_s22, 4294967168  ;;  %p316_p7 = scmp.ne.s32.totalorder %s536_s13, 0 }
  0x4f   : > { %v500_v0 = vmov (!%p316_p7), 0.0  }
  0x50   : > { %187 = sbr.rel (%p316_p7) target bundleno = 87 (0x57), region = 40  ;;  %188 = vst [vmem:[#allocation2] sm:$0xff] (!%p316_p7), %v500_v0 }
  0x57 PF: > { %v190_v1 = vld [vmem:[%s163_s23] sm:$0xff]  ;;  %v189_v4 = vld [vmem:[%s154_s15] sm:$0xff]  ;;  %p317_p8 = scmp.ne.s32.totalorder %s536_s13, 1 }
  0x58   : > { %v193_v2 = vand.u32 2147483647, %v190_v1  ;;  %v191_v5 = vsub.f32 %v189_v4, %v190_v1  ;;  %v197_v9 = vld [vmem:[#allocation2] sm:$0xff] }
  0x5a   : > { %v194_v3 = vadd.f32 1e-08, %v193_v2  ;;  %v192_v6 = vand.u32 2147483647, %v191_v5 }
  0x5c   : > { %378 = vrcp.f32 %v194_v3 }
  0x66   : > { %v379_v7 = vpop.eup %378 }
  0x67   : > { %v196_v8 = vmul.f32 %v379_v7, %v192_v6  ;;  %204 = sbr.rel (%p317_p8) target bundleno = 390 (0x186), region = 44 }
  0x69   : > { %v198_v10 = vmul.f32 %v196_v8, %v196_v8 }
  0x6b   : > { %v199_v11 = vadd.f32 %v198_v10, %v197_v9 }
  0x6d   : > { %200 = vst [vmem:[#allocation2] sm:$0xff] %v199_v11 }
  0x74   : > { %v205_v12 = vld [vmem:[#allocation2] sm:$0xff] }
  0x75   : > { %206 = vadd.xlane.f32.xlu0 %v205_v12 }
 0x102   : > { %v207_v13 = vpop.xlane.xlu0 %206 }
 0x103   : > { %v208_v14 = vrot.slane %v207_v13, 4 }
 0x105   : > { %v209_v15 = vadd.f32 %v208_v14, %v207_v13 }
 0x107   : > { %v210_v16 = vrot.slane %v209_v15, 2 }
 0x109   : > { %v211_v17 = vadd.f32 %v210_v16, %v209_v15 }
 0x10b   : > { %v212_v18 = vrot.slane %v211_v17, 1 }
 0x10d   : > { %v213_v19 = vadd.f32 %v212_v18, %v211_v17 }
 0x10f   : > { %322 = vpush %v213_v19 }
 0x140   : > { %s323_s18 = spop %322 }
 0x141   : > { %s215_s27 = smul.f32 0.00048828125, %s323_s18 }
 0x143   : > { %v216_v20 = vstv %s215_s27 }
 0x144   : > { %380 = vrsqrt.f32 %v216_v20  ;;  %vm219_vm0 = vcmp.eq.f32.partialorder %v216_v20, inf  ;;  %v222_v23 = vand.u32 2147483648, %v216_v20  ;;  %vm221_vm1 = vcmp.eq.f32.partialorder %v216_v20, 0.0 }
 0x14e   : > { %v381_v21 = vpop.eup %380 }
 0x14f   : > { %v218_v22 = vmul.f32 %v381_v21, %v216_v20 }
 0x151   : > { %v220_v24 = vsel %vm219_vm0, %v216_v20, %v218_v22 }
 0x152   : > { %v223_v25 = vsel %vm221_vm1, %v222_v23, %v220_v24 }
 0x153   : > { %324 = vpush %v223_v25 }
 0x184   : > { %s325_s16 = spop %324 }
 0x185   : > { %226 = sst [smem:[#allocation8]] %s325_s16 }
 0x186 PF: > { %p342_p5 = scmp.eq.s32.totalorder %s536_s13, 1  ;;  %s442_s30 = scalar_lea.hbm %s683_s2, 16 }
 0x187   : > { %p443_p1 = scmp.ne.s32.totalorder %s683_s2, %s442_s30  ;;  %p448_p0 = scmp.lt.u32.totalorder %s442_s30, %s683_s2 }
 0x189   : > { %p444_p2 = pnand %p443_p1, %p342_p5 }
 0x18b   : > { %p445_p3 = pneg %p444_p2 }
 0x18d   : > { %p450_p4 = pnand %p448_p0, %p445_p3 }
 0x18f   : > { %453 = shalt.err (!%p450_p4)
}
 0x190   : > { %s501_s21 = smov [#allocation8]  }
 0x191   : > { %331 = dma.smem_to_hbm (%p342_p5), %s501_s21, 16, %s683_s2, [#allocation5]  }
 0x192   : > { %479 = dma.done.wait (%p342_p5), [#allocation5], 16  }
 0x193   : > { %481 = vsyncadd (%p342_p5), [#allocation5], 4294967280 }
 0x194   : > { %240 = sfence }
 0x195 PF: > { %p16_p9 = scmp.ge.s32.totalorder %s539_s14, 4   ;;  %s692_s9 = smov %s488_s10 }
 0x196   : > { %s693_s10 = smov %s492_s11  ;;  %s694_s11 = smov %s549_s17 }
 0x197   : > { %s695_s12 = smov %s539_s14  ;;  %18 = sbr.rel (!%p16_p9) target bundleno = 6 (0x6), region = 87 }
 0x19e   :  { %246 = vsyncpa [#allocation4], 1 }
 0x19f   :  { %248 = vsyncpa [#allocation4 + $0x1], 1 }
 0x1a0   :  { %249 = vsyncpa [#allocation7], 1 }
 0x1a1   :  { %251 = vsyncpa [#allocation7 + $0x1], 1 }
 0x1a2   :  { %252 = vsyncpa [#allocation5], 1 }
 0x1a3   :  { %254 = vsyncpa [#allocation5 + $0x1], 1 }

</bundles_post_ra>
